<compile_context>
chip_gen: v5e
topology: v5e:2x2
jax: 0.10.0
libtpu: 0.0.40
codegen_flags: <defaults>
</compile_context>

<pallas_src>
import functools

import jax
import jax.numpy as jnp
from jax.experimental import pallas as pl
from jax.experimental.pallas import tpu as pltpu
import numpy as np


def _round_up(v, m):
    return ((v + m - 1) // m) * m


def _lane_width(n_pads, n_ports, hidden_dims):
    out_dim = n_ports * n_ports * 2
    return max(_round_up(max(hidden_dims), 128),
               _round_up(out_dim, 128),
               _round_up(n_pads, 128))


def _pick_tb(B):
    """Batch tile policy (perf review):

    Grid steps are serial on v5e/v6e (one TensorCore), so never split a small
    batch just to have >1 step.  One step up to 512 rows; beyond that use
    512-row tiles so every step carries >=128 MXU rows (amortizes the
    ~0.35us/step overhead and makes v7x's megacore 'parallel' split pay).
    VMEM at TB=512 is ~1-2 MB -> far under every generation's scoped limit,
    so TB is chosen for MXU/TC occupancy, not memory.
    """
    if B <= 512:
        return _round_up(max(B, 1), 8)
    return 512


def dpe_mlp_kernel(x_ref, w1_ref, wh_ref, bp_ref, out_ref, *,
                   n_pads, r_pad, lw, compute_dtype):
    """cos feature + 4 lane-dense matmuls (3 with ReLU), all per batch tile.

    w1_ref packs [W1_cos (r_pad,lw) | W1_x (r_pad,lw)]   (f32, sublane-aligned)
    wh_ref packs [W2 | W3 | W4_sym] row-wise, each (lw,lw), dtype = compute_dtype
    bp_ref rows: 0..3 = b1..b4_sym, 4 = freq, 5 = phase_bias (zero-padded to lw).
    """
    x = x_ref[...]                                        # (TB, n_pads)
    freq = bp_ref[4:5, :][:, :n_pads]                     # (1, n_pads)
    pb = bp_ref[5:6, :][:, :n_pads]                       # (1, n_pads)
    cosx = jnp.cos(x * freq + pb)                         # EUP; free next to MXU

    # Layer 1: two summed K=n_pads dots instead of an in-kernel concat.
    h = (jnp.dot(cosx, w1_ref[0:n_pads, :], preferred_element_type=jnp.float32)
         + jnp.dot(x, w1_ref[r_pad:r_pad + n_pads, :],
                   preferred_element_type=jnp.float32)
         + bp_ref[0:1, :])
    h = jnp.maximum(h, 0.0)

    # Hidden + output layers (weights possibly bf16; accumulate in f32).
    h = jnp.maximum(
        jnp.dot(h.astype(compute_dtype), wh_ref[0:lw, :],
                preferred_element_type=jnp.float32) + bp_ref[1:2, :], 0.0)
    h = jnp.maximum(
        jnp.dot(h.astype(compute_dtype), wh_ref[lw:2 * lw, :],
                preferred_element_type=jnp.float32) + bp_ref[2:3, :], 0.0)
    out_ref[...] = (
        jnp.dot(h.astype(compute_dtype), wh_ref[2 * lw:3 * lw, :],
                preferred_element_type=jnp.float32) + bp_ref[3:4, :])


def make_params(key, n_pads, n_ports, hidden_dims):
    """Deterministic synthetic parameters matching DPE_BASE.build_layers shapes."""
    cfg = [n_pads * 2] + list(hidden_dims) + [n_ports * n_ports * 2]  # is_complex=True
    params = {
        "freq": jnp.full((1, n_pads), np.pi, dtype=jnp.float32),   # nn.Parameter ones*pi
        "phase_bias": jnp.zeros((1, n_pads), dtype=jnp.float32),   # nn.Parameter zeros
    }
    ws, bs = [], []
    for cin, cout in zip(cfg[:-1], cfg[1:]):
        key, kw, kb = jax.random.split(key, 3)
        scale = 1.0 / np.sqrt(cin)
        ws.append(jax.random.uniform(kw, (cin, cout), jnp.float32, -scale, scale))
        bs.append(jax.random.uniform(kb, (1, cout), jnp.float32, -scale, scale))
    params["ws"] = ws
    params["bs"] = bs
    return params


def pack_params(params, *, n_pads, n_ports, hidden_dims, use_bf16=False):
    """One-time host-side prep: fold symmetrization into layer 4, pad to 128
    lanes, split layer-1 weights into cos/x halves, and pack into three
    lane-aligned buffers (layer-1 f32, hidden weights optionally bf16)."""
    ws, bs = params["ws"], params["bs"]
    P = n_ports
    out_dim = P * P * 2
    r_pad = _round_up(n_pads, 8)
    lw = _lane_width(n_pads, n_ports, hidden_dims)

    # Fold (W + W^T)/2 into the last linear layer: it's a fixed column
    # permutation + average, numerically equivalent (linear op).
    idx = np.arange(out_dim).reshape(P, P, 2)
    perm = jnp.asarray(np.transpose(idx, (1, 0, 2)).reshape(-1))
    w4 = 0.5 * (ws[3] + ws[3][:, perm])
    b4 = 0.5 * (bs[3] + bs[3][:, perm])

    def pad2(a, rows, cols):
        return jnp.pad(a, ((0, rows - a.shape[0]), (0, cols - a.shape[1])))

    # Layer-1 rows split: rows 0:n_pads act on cos(x*f+p), rows n_pads: act on x.
    w1pack = jnp.concatenate([
        pad2(ws[0][:n_pads, :], r_pad, lw),      # W1_cos
        pad2(ws[0][n_pads:, :], r_pad, lw),      # W1_x
    ], axis=0)

    hidden_dtype = jnp.bfloat16 if use_bf16 else jnp.float32
    whpack = jnp.concatenate([
        pad2(ws[1], lw, lw),     # W2
        pad2(ws[2], lw, lw),     # W3
        pad2(w4, lw, lw),        # W4 with symmetrization folded in
    ], axis=0).astype(hidden_dtype)

    bpack = jnp.concatenate([
        pad2(bs[0], 1, lw), pad2(bs[1], 1, lw),
        pad2(bs[2], 1, lw), pad2(b4, 1, lw),
        pad2(params["freq"], 1, lw),
        pad2(params["phase_bias"], 1, lw),
        jnp.zeros((2, lw), jnp.float32),      # pad rows to a sublane multiple (8)
    ], axis=0)
    return w1pack, whpack, bpack


@functools.partial(jax.jit, static_argnames=("n_pads", "n_ports", "hidden_dims"))
def dpe_forward(x, w1pack, whpack, bpack, *, n_pads, n_ports, hidden_dims):
    B = x.shape[0]
    P = n_ports
    out_dim = P * P * 2
    r_pad = _round_up(n_pads, 8)
    lw = _lane_width(n_pads, n_ports, hidden_dims)

    TB = _pick_tb(B)
    grid_b = pl.cdiv(B, TB)
    B_pad = grid_b * TB
    if B_pad != B:
        x = jnp.pad(x, ((0, B_pad - B), (0, 0)))

    kern = functools.partial(dpe_mlp_kernel, n_pads=n_pads, r_pad=r_pad, lw=lw,
                             compute_dtype=whpack.dtype)

    flops = 2 * B_pad * lw * (2 * n_pads + 3 * lw)
    bytes_accessed = (4 * (B_pad * n_pads + w1pack.size + bpack.size + B_pad * lw)
                      + int(whpack.size) * whpack.dtype.itemsize)

    raw = pl.pallas_call(
        kern,
        out_shape=jax.ShapeDtypeStruct((B_pad, lw), jnp.float32),
        grid=(grid_b,),
        in_specs=[
            pl.BlockSpec((TB, n_pads), lambda i: (i, 0)),        # x (batch-tiled)
            pl.BlockSpec(w1pack.shape, lambda i: (0, 0)),        # layer-1 weights (f32)
            pl.BlockSpec(whpack.shape, lambda i: (0, 0)),        # W2|W3|W4_sym
            pl.BlockSpec(bpack.shape, lambda i: (0, 0)),         # biases/freq/phase
        ],
        out_specs=pl.BlockSpec((TB, lw), lambda i: (i, 0)),      # lane-dense output
        compiler_params=pltpu.CompilerParams(
            dimension_semantics=("parallel",)),
        cost_estimate=pl.CostEstimate(
            flops=flops,
            transcendentals=B_pad * n_pads,
            bytes_accessed=bytes_accessed),
    )(x, w1pack, whpack, bpack)

    # Symmetrization already folded into layer 4; drop padding + view-as-complex.
    W = raw[:B, :out_dim].reshape(B, P, P, 2)
    return jax.lax.complex(W[..., 0], W[..., 1])


def dpe_forward_ref(x, params, *, n_pads, n_ports):
    """Pure-JAX reference mirroring the PyTorch forward (for a sanity check)."""
    ws, bs = params["ws"], params["bs"]
    pre = jnp.concatenate(
        [jnp.cos(x * params["freq"] + params["phase_bias"]), x], axis=1)
    h = pre
    for i in range(3):
        h = jnp.maximum(h @ ws[i] + bs[i], 0.0)
    out = h @ ws[3] + bs[3]
    W = out.reshape(x.shape[0], n_ports, n_ports, 2)
    W = (W + jnp.transpose(W, (0, 2, 1, 3))) * 0.5
    return jax.lax.complex(W[..., 0], W[..., 1])


if __name__ == "__main__":
    n_pads = 4
    n_ports = 4
    hidden_dims = (128, 128, 128)   # module default cfg
    batch = 16                      # -> TB=16, single grid step (no forced split)

    key = jax.random.PRNGKey(0)
    key, kx = jax.random.split(key)
    x = jax.random.uniform(kx, (batch, n_pads), jnp.float32, 0.0, 1.0)

    params = make_params(key, n_pads, n_ports, hidden_dims)
    W_ref = dpe_forward_ref(x, params, n_pads=n_pads, n_ports=n_ports)

    # Default f32 path: tight check against the pure-JAX reference.
    w1p, whp, bp = pack_params(params, n_pads=n_pads, n_ports=n_ports,
                               hidden_dims=hidden_dims, use_bf16=False)
    W = jax.block_until_ready(
        dpe_forward(x, w1p, whp, bp, n_pads=n_pads, n_ports=n_ports,
                    hidden_dims=hidden_dims))
    assert W.shape == (batch, n_ports, n_ports)
    assert W.dtype == jnp.complex64
    np.testing.assert_allclose(np.asarray(W), np.asarray(W_ref),
                               rtol=1e-4, atol=1e-5)

    # Optional bf16 hidden-weight path (MXU peak on v6e/v7x is bf16-only);
    # precision is intentionally reduced, so only a coarse sanity check.
    w1p16, whp16, bp16 = pack_params(params, n_pads=n_pads, n_ports=n_ports,
                                     hidden_dims=hidden_dims, use_bf16=True)
    W16 = jax.block_until_ready(
        dpe_forward(x, w1p16, whp16, bp16, n_pads=n_pads, n_ports=n_ports,
                    hidden_dims=hidden_dims))
    assert float(jnp.max(jnp.abs(W16 - W_ref))) < 5e-2

    print("KERNEL_OK")
</pallas_src>

<mosaic_0001>
module attributes {stable_mosaic.version = 11 : i64} {
  func.func @dpe_mlp_kernel(%arg0: i32, %arg1: memref<16x4xf32, #tpu.memory_space<vmem>>, %arg2: memref<16x128xf32, #tpu.memory_space<vmem>>, %arg3: memref<384x128xf32, #tpu.memory_space<vmem>>, %arg4: memref<8x128xf32, #tpu.memory_space<vmem>>, %arg5: memref<16x128xf32, #tpu.memory_space<vmem>>) attributes {dimension_semantics = [#tpu.dimension_semantics<parallel>], iteration_bounds = array<i64: 1>, scalar_prefetch = 0 : i64, scratch_operands = 0 : i64, tpu.core_type = #tpu.core_type<tc>, window_params = [{transform_indices = @transform_0, window_bounds = array<i64: 16, 4>}, {pipeline_mode = #tpu.pipeline_mode<synchronous>, transform_indices = @transform_1, window_bounds = array<i64: 16, 128>}, {pipeline_mode = #tpu.pipeline_mode<synchronous>, transform_indices = @transform_2, window_bounds = array<i64: 384, 128>}, {pipeline_mode = #tpu.pipeline_mode<synchronous>, transform_indices = @transform_3, window_bounds = array<i64: 8, 128>}, {transform_indices = @transform_4, window_bounds = array<i64: 16, 128>}]} {
    %c0 = arith.constant 0 : index
    %c0_0 = arith.constant 0 : index
    %0 = vector.load %arg1[%c0, %c0_0] : memref<16x4xf32, #tpu.memory_space<vmem>>, vector<16x4xf32>
    %c4 = arith.constant 4 : index
    %c0_1 = arith.constant 0 : index
    %1 = vector.load %arg4[%c4, %c0_1] : memref<8x128xf32, #tpu.memory_space<vmem>>, vector<1x128xf32>
    %2 = vector.extract_strided_slice %1 {offsets = [0, 0], sizes = [1, 4], strides = [1, 1]} : vector<1x128xf32> to vector<1x4xf32>
    %c5 = arith.constant 5 : index
    %c0_2 = arith.constant 0 : index
    %3 = vector.load %arg4[%c5, %c0_2] : memref<8x128xf32, #tpu.memory_space<vmem>>, vector<1x128xf32>
    %4 = vector.extract_strided_slice %3 {offsets = [0, 0], sizes = [1, 4], strides = [1, 1]} : vector<1x128xf32> to vector<1x4xf32>
    %5 = vector.broadcast %2 : vector<1x4xf32> to vector<16x4xf32>
    %6 = arith.mulf %0, %5 : vector<16x4xf32>
    %7 = vector.broadcast %4 : vector<1x4xf32> to vector<16x4xf32>
    %8 = arith.addf %6, %7 : vector<16x4xf32>
    %9 = math.cos %8 : vector<16x4xf32>
    %c0_3 = arith.constant 0 : index
    %c0_4 = arith.constant 0 : index
    %10 = vector.load %arg2[%c0_3, %c0_4] : memref<16x128xf32, #tpu.memory_space<vmem>>, vector<4x128xf32>
    %cst = arith.constant dense<0.000000e+00> : vector<16x128xf32>
    %11 = tpu.matmul %9, %10, %cst {dimension_numbers = #tpu.dot_dimension_numbers<[1], [0], [0], [1], [0, 0, 1, 1], [], []>} : vector<16x4xf32>, vector<4x128xf32>, vector<16x128xf32> -> vector<16x128xf32>
    %c8 = arith.constant 8 : index
    %c0_5 = arith.constant 0 : index
    %12 = vector.load %arg2[%c8, %c0_5] : memref<16x128xf32, #tpu.memory_space<vmem>>, vector<4x128xf32>
    %cst_6 = arith.constant dense<0.000000e+00> : vector<16x128xf32>
    %13 = tpu.matmul %0, %12, %cst_6 {dimension_numbers = #tpu.dot_dimension_numbers<[1], [0], [0], [1], [0, 0, 1, 1], [], []>} : vector<16x4xf32>, vector<4x128xf32>, vector<16x128xf32> -> vector<16x128xf32>
    %14 = arith.addf %11, %13 : vector<16x128xf32>
    %c0_7 = arith.constant 0 : index
    %c0_8 = arith.constant 0 : index
    %15 = vector.load %arg4[%c0_7, %c0_8] : memref<8x128xf32, #tpu.memory_space<vmem>>, vector<1x128xf32>
    %16 = vector.broadcast %15 : vector<1x128xf32> to vector<16x128xf32>
    %17 = arith.addf %14, %16 : vector<16x128xf32>
    %cst_9 = arith.constant 0.000000e+00 : f32
    %18 = vector.broadcast %cst_9 : f32 to vector<16x128xf32>
    %19 = arith.maximumf %17, %18 : vector<16x128xf32>
    %c0_10 = arith.constant 0 : index
    %c0_11 = arith.constant 0 : index
    %20 = vector.load %arg3[%c0_10, %c0_11] : memref<384x128xf32, #tpu.memory_space<vmem>>, vector<128x128xf32>
    %cst_12 = arith.constant dense<0.000000e+00> : vector<16x128xf32>
    %21 = tpu.matmul %19, %20, %cst_12 {dimension_numbers = #tpu.dot_dimension_numbers<[1], [0], [0], [1], [0, 0, 1, 1], [], []>} : vector<16x128xf32>, vector<128x128xf32>, vector<16x128xf32> -> vector<16x128xf32>
    %c1 = arith.constant 1 : index
    %c0_13 = arith.constant 0 : index
    %22 = vector.load %arg4[%c1, %c0_13] : memref<8x128xf32, #tpu.memory_space<vmem>>, vector<1x128xf32>
    %23 = vector.broadcast %22 : vector<1x128xf32> to vector<16x128xf32>
    %24 = arith.addf %21, %23 : vector<16x128xf32>
    %cst_14 = arith.constant 0.000000e+00 : f32
    %25 = vector.broadcast %cst_14 : f32 to vector<16x128xf32>
    %26 = arith.maximumf %24, %25 : vector<16x128xf32>
    %c128 = arith.constant 128 : index
    %c0_15 = arith.constant 0 : index
    %27 = vector.load %arg3[%c128, %c0_15] : memref<384x128xf32, #tpu.memory_space<vmem>>, vector<128x128xf32>
    %cst_16 = arith.constant dense<0.000000e+00> : vector<16x128xf32>
    %28 = tpu.matmul %26, %27, %cst_16 {dimension_numbers = #tpu.dot_dimension_numbers<[1], [0], [0], [1], [0, 0, 1, 1], [], []>} : vector<16x128xf32>, vector<128x128xf32>, vector<16x128xf32> -> vector<16x128xf32>
    %c2 = arith.constant 2 : index
    %c0_17 = arith.constant 0 : index
    %29 = vector.load %arg4[%c2, %c0_17] : memref<8x128xf32, #tpu.memory_space<vmem>>, vector<1x128xf32>
    %30 = vector.broadcast %29 : vector<1x128xf32> to vector<16x128xf32>
    %31 = arith.addf %28, %30 : vector<16x128xf32>
    %cst_18 = arith.constant 0.000000e+00 : f32
    %32 = vector.broadcast %cst_18 : f32 to vector<16x128xf32>
    %33 = arith.maximumf %31, %32 : vector<16x128xf32>
    %c256 = arith.constant 256 : index
    %c0_19 = arith.constant 0 : index
    %34 = vector.load %arg3[%c256, %c0_19] : memref<384x128xf32, #tpu.memory_space<vmem>>, vector<128x128xf32>
    %cst_20 = arith.constant dense<0.000000e+00> : vector<16x128xf32>
    %35 = tpu.matmul %33, %34, %cst_20 {dimension_numbers = #tpu.dot_dimension_numbers<[1], [0], [0], [1], [0, 0, 1, 1], [], []>} : vector<16x128xf32>, vector<128x128xf32>, vector<16x128xf32> -> vector<16x128xf32>
    %c3 = arith.constant 3 : index
    %c0_21 = arith.constant 0 : index
    %36 = vector.load %arg4[%c3, %c0_21] : memref<8x128xf32, #tpu.memory_space<vmem>>, vector<1x128xf32>
    %37 = vector.broadcast %36 : vector<1x128xf32> to vector<16x128xf32>
    %38 = arith.addf %35, %37 : vector<16x128xf32>
    %c0_22 = arith.constant 0 : index
    %c0_23 = arith.constant 0 : index
    %39 = vector.load %arg5[%c0_22, %c0_23] : memref<16x128xf32, #tpu.memory_space<vmem>>, vector<16x128xf32>
    tpu.vector_store %arg5[%c0_22, %c0_23], %38 {strides = array<i32>} : memref<16x128xf32, #tpu.memory_space<vmem>>, vector<16x128xf32>,
    return
  }
  func.func @transform_0(%arg0: i32) -> (i32, i32) {
    %c0_i32 = arith.constant 0 : i32
    %c0_i32_0 = arith.constant 0 : i32
    return %arg0, %c0_i32 : i32, i32
  }
  func.func @transform_1(%arg0: i32) -> (i32, i32) {
    %c0_i32 = arith.constant 0 : i32
    %c0_i32_0 = arith.constant 0 : i32
    %c0_i32_1 = arith.constant 0 : i32
    return %c0_i32, %c0_i32_0 : i32, i32
  }
  func.func @transform_2(%arg0: i32) -> (i32, i32) {
    %c0_i32 = arith.constant 0 : i32
    %c0_i32_0 = arith.constant 0 : i32
    %c0_i32_1 = arith.constant 0 : i32
    return %c0_i32, %c0_i32_0 : i32, i32
  }
  func.func @transform_3(%arg0: i32) -> (i32, i32) {
    %c0_i32 = arith.constant 0 : i32
    %c0_i32_0 = arith.constant 0 : i32
    %c0_i32_1 = arith.constant 0 : i32
    return %c0_i32, %c0_i32_0 : i32, i32
  }
  func.func @transform_4(%arg0: i32) -> (i32, i32) {
    %c0_i32 = arith.constant 0 : i32
    %c0_i32_0 = arith.constant 0 : i32
    return %arg0, %c0_i32 : i32, i32
  }
}

</mosaic_0001>

<bundles_post_ra>
// kernel: custom-call
= control target key start
LH: loop header
LB: loop body
LE: loop exit
PB: predicated region body
PF: predicated region fallthrough
CT: control target
= control target key end

     0   :  { %s105_s0 = inlined_call_operand.vmem [shape: f32[16,4,4], index: 0, kind: input, shape index: {}]   ;;  %s106_s1 = inlined_call_operand.vmem [shape: f32[16,4,4], index: 1, kind: input, shape index: {}]   ;;  %s107_s2 = inlined_call_operand.hbm [shape: c64[16,4,4], index: 2, kind: output, shape index: {}]  }
   0x1   :  { %s3_s11 = scalar_lea.hbm %s107_s2, 16 }
   0x2   :  { %4 = vsyncpa [#allocation0], 0  ;;  %s6_s14 = sshll.u32 %s105_s0, 4  ;;  %s8_s17 = sshll.u32 %s107_s2, 4  ;;  %s7_s14 = int_to_ptr.vmem [resolvable:$true] %s6_s14  ;;  %s9_s17 = int_to_ptr.hbm [resolvable:$true] %s8_s17 }
   0x3   :  { %11 = dma.vmem_to_hbm [thread:$0]  %s7_s14, 256, %s9_s17, [#allocation0] }
   0x4   :  { %74 = dma.done.wait [#allocation0], 256  }
   0x5   :  { %75 = vsyncadd [#allocation0], 4294967040 }
   0x6   :  { %14 = vsyncpa [#allocation0], 1 }
   0x7   :  { %15 = vsyncpa [#allocation1], 0  ;;  %s17_s20 = sshll.u32 %s106_s1, 4  ;;  %s19_s21 = sshll.u32 %s3_s11, 4  ;;  %s18_s20 = int_to_ptr.vmem [resolvable:$true] %s17_s20  ;;  %s20_s21 = int_to_ptr.hbm [resolvable:$true] %s19_s21 }
   0x8   :  { %22 = dma.vmem_to_hbm [thread:$0]  %s18_s20, 256, %s20_s21, [#allocation1] }
   0x9   :  { %76 = dma.done.wait [#allocation1], 256  }
   0xa   :  { %77 = vsyncadd [#allocation1], 4294967040 }
   0xb   :  { %25 = vsyncpa [#allocation1], 1 }

// kernel: dpe_forward.1
= control target key start
LH: loop header
LB: loop body
LE: loop exit
PB: predicated region body
PF: predicated region fallthrough
CT: control target
= control target key end

     0   :  { %9 = vsyncpa [#allocation3], 0  ;;  %s916_s0 = inlined_call_operand.vmem [shape: f32[16,4], index: 0, kind: input, shape index: {}]   ;;  %s917_s1 = inlined_call_operand.vmem [shape: f32[16,128], index: 1, kind: input, shape index: {}]   ;;  %s918_s2 = inlined_call_operand.hbm [shape: f32[384,128], index: 2, kind: input, shape index: {}]   ;;  %s919_s3 = inlined_call_operand.hbm [shape: f32[8,128], index: 3, kind: input, shape index: {}]   ;;  %s920_s4 = inlined_call_operand.vmem [shape: f32[16,128], index: 4, kind: output, shape index: {}]  }
   0x1   :  { %s19_s17 = sshll.u32 %s918_s2, 4  ;;  %s20_s17 = int_to_ptr.hbm [resolvable:$true] %s19_s17 }
   0x2   :  { %10 = vsyncpa [#allocation5], 0  ;;  %s671_s18 = smov [#allocation2]   ;;  %s33_s22 = sshll.u32 %s919_s3, 4  ;;  %s34_s22 = int_to_ptr.hbm [resolvable:$true] %s33_s22 }
   0x3   :  { %s21_s19 = sshll.u32 %s671_s18, 4  ;;  %s672_s23 = smov 128   ;;  %s22_s19 = int_to_ptr.vmem [resolvable:$true] %s21_s19 }
   0x4   :  { %s673_s24 = smov 8   ;;  %s674_s25 = smov [#allocation4]  }
   0x5   :  { %27 = dma.hbm_to_vmem [thread:$0]  %s20_s17, 6144, %s22_s19, [#allocation3], %s672_s23, %s672_s23, %s673_s24  }
   0x6   :  { %s35_s26 = sshll.u32 %s674_s25, 4  ;;  %s36_s26 = int_to_ptr.vmem [resolvable:$true] %s35_s26 }
   0x7   :  { %38 = dma.hbm_to_vmem [thread:$0]  %s34_s22, 128, %s36_s26, [#allocation5]  }
   0x8   :  { %667 = dma.done.wait [#allocation3], 6144  }
   0x9   :  { %668 = vsyncadd [#allocation3], 4294961152 }
   0xa   :  { %669 = dma.done.wait [#allocation5], 128  }
   0xb   :  { %670 = vsyncadd [#allocation5], 4294967168  ;;  %vm374_vm0 = vcmask 1043456   ;;  %vm367_vm1 = vcmask 31744   ;;  %v366_v0 = vld [vmem:[%s917_s1 + $0x8] sm:$0xf] }
   0xc   :  { %v365_v1 = vld [vmem:[%s917_s1] sm:$0xf]  ;;  %580 = vmatpush.msk.msra.mxu0 %vm374_vm0, %v366_v0  ;;  %v613_v3 = vld [vmem:[#allocation4 + $0x4] ss:$0 sm:$0xff]  ;;  %v614_v4 = vld [vmem:[#allocation4 + $0x5] ss:$0 sm:$0xff] }
   0xd   :  { %v47_v2 = vld [vmem:[%s916_s0] sm:$0xff]  ;;  %583 = vmatpush.msk.msra.mxu1 %vm374_vm0, %v365_v1  ;;  %v48_v5 = vld [vmem:[%s916_s0 + $0x8] sm:$0xff]  ;;  %v675_v31 = vmov 683565275   ;;  %v676_v33 = vmov 2475754826  }
   0xe   :  { %581 = vmatmul.msk.f32.vlgmr.msra.gmra.mxu0 %vm367_vm1, %v47_v2  ;;  %v52_v6 = vmul.f32 %v613_v3, %v47_v2  ;;  %v53_v7 = vmul.f32 %v613_v3, %v48_v5  ;;  %v677_v35 = vmov 2131351028   ;;  %v678_v37 = vmov 2102212464  }
   0xf   :  { %v679_v39 = vmov 920167782   ;;  %v680_v48 = vmov 1326507024  }
  0x10   :  { %v726_v8 = vadd.f32 %v614_v4, %v52_v6  ;;  %v728_v9 = vadd.f32 %v614_v4, %v53_v7 }
  0x12   :  { %v60_v10 = vand.u32 2139095040, %v726_v8  ;;  %v57_v11 = vand.u32 2147483647, %v726_v8  ;;  %v214_v12 = vand.u32 2139095040, %v728_v9  ;;  %v211_v13 = vand.u32 2147483647, %v728_v9 }
  0x14   :  { %v61_v14 = vshrl.u32 %v60_v10, 23  ;;  %v64_v15 = vand.u32 8388607, %v57_v11  ;;  %v215_v16 = vshrl.u32 %v214_v12, 23  ;;  %v218_v20 = vand.u32 8388607, %v211_v13 }
  0x16   :  { %582 = vmatmul.msk.f32.gmra.mxu0 %vm367_vm1, %v48_v5  ;;  %v574_v17 = vadd.s32 4294967169, %v61_v14  ;;  %v577_v18 = vadd.s32 4294967169, %v215_v16  ;;  %v65_v19 = vor.u32 8388608, %v64_v15  ;;  %v219_v26 = vor.u32 8388608, %v218_v20 }
  0x18   :  { %v67_v21 = vadd.s32 1, %v574_v17  ;;  %v221_v22 = vadd.s32 1, %v577_v18  ;;  %v739_v24 = vshll.u32 %v65_v19, 8  ;;  %v749_v42 = vshll.u32 %v219_v26, 8 }
  0x1a   :  { %vm68_vm2 = vcmp.gt.s32.totalorder %v67_v21, 0  ;;  %vm222_vm3 = vcmp.gt.s32.totalorder %v221_v22, 0  ;;  %v106_v41 = vand.u32 65535, %v739_v24  ;;  %v107_v46 = vshrl.u32 %v739_v24, 16 }
  0x1b   :  { %v69_v23 = vsel %vm68_vm2, %v67_v21, 0  ;;  %v223_v25 = vsel %vm222_vm3, %v221_v22, 0 }
  0x1c   :  { %v71_v27 = vand.u32 31, %v69_v23  ;;  %v741_v28 = vshrl.u32 %v69_v23, 5  ;;  %v743_v29 = vand.u32 31, %v223_v25  ;;  %v767_v59 = vshrl.u32 %v223_v25, 5 }
  0x1e   :  { %v72_v30 = vsub.s32 32, %v71_v27  ;;  %v74_v32 = vshll.u32 %v675_v31, %v71_v27  ;;  %v77_v34 = vshll.u32 %v676_v33, %v71_v27  ;;  %v80_v36 = vshll.u32 %v677_v35, %v71_v27 }
  0x1f   :  { %v83_v38 = vshll.u32 %v678_v37, %v71_v27  ;;  %v86_v40 = vshll.u32 %v679_v39, %v71_v27  ;;  %vm89_vm4 = vcmp.lt.s32.totalorder %v741_v28, 1  ;;  %vm92_vm5 = vcmp.lt.s32.totalorder %v741_v28, 4 }
  0x20   :  { %v75_v43 = vshrl.u32 %v676_v33, %v72_v30  ;;  %v78_v44 = vshrl.u32 %v677_v35, %v72_v30  ;;  %v81_v45 = vshrl.u32 %v678_v37, %v72_v30  ;;  %v84_v47 = vshrl.u32 %v679_v39, %v72_v30 }
  0x21   :  { %v87_v49 = vshrl.u32 %v680_v48, %v72_v30  ;;  %v758_v53 = vsub.s32 32, %v743_v29  ;;  %v73_v54 = vshrl.u32 %v675_v31, %v72_v30  ;;  %vm91_vm6 = vcmp.lt.s32.totalorder %v741_v28, 3 }
  0x22   :  { %v76_v50 = vor.u32 %v75_v43, %v74_v32  ;;  %v79_v51 = vor.u32 %v78_v44, %v77_v34  ;;  %v82_v52 = vor.u32 %v81_v45, %v80_v36  ;;  %v85_v55 = vor.u32 %v84_v47, %v83_v38 }
  0x23   :  { %v88_v56 = vor.u32 %v87_v49, %v86_v40  ;;  %vm90_vm7 = vcmp.lt.s32.totalorder %v741_v28, 2  ;;  %v228_v62 = vshll.u32 %v675_v31, %v743_v29  ;;  %v231_v63 = vshll.u32 %v676_v33, %v743_v29 }
  0x24   :  { %v97_v57 = vsel %vm89_vm4, %v76_v50, %v79_v51  ;;  %v101_v58 = vsel %vm89_vm4, %v79_v51, %v82_v52  ;;  %v98_v60 = vsel %vm92_vm5, %v85_v55, 920167782  ;;  %v94_v0 = vsel %vm92_vm5, %v82_v52, 2102212464 }
  0x25   :  { %v102_v61 = vsel %vm92_vm5, %v88_v56, 1326507024  ;;  %v99_v1 = vsel %vm91_vm6, %v82_v52, %v98_v60  ;;  %v229_v3 = vshrl.u32 %v676_v33, %v758_v53  ;;  %v93_v4 = vsel %vm89_vm4, %v73_v54, %v76_v50 }
  0x26   :  { %v103_v2 = vsel %vm91_vm6, %v85_v55, %v102_v61  ;;  %v100_v5 = vsel %vm90_vm7, %v97_v57, %v99_v1  ;;  %v232_v7 = vshrl.u32 %v677_v35, %v758_v53  ;;  %v95_v16 = vsel %vm91_vm6, %v79_v51, %v94_v0 }
  0x27   :  { %v104_v6 = vsel %vm90_vm7, %v101_v58, %v103_v2  ;;  %v130_v14 = vand.u32 65535, %v100_v5  ;;  %v131_v15 = vshrl.u32 %v100_v5, 16  ;;  %v792_v17 = vor.u32 %v229_v3, %v228_v62 }
  0x28   :  { %v108_v10 = vand.u32 65535, %v104_v6  ;;  %v109_v12 = vshrl.u32 %v104_v6, 16  ;;  %v794_v18 = vor.u32 %v232_v7, %v231_v63  ;;  %v234_v19 = vshll.u32 %v677_v35, %v743_v29 }
  0x29   :  { %v235_v23 = vshrl.u32 %v678_v37, %v758_v53  ;;  %v132_v26 = vmul.u32 %v130_v14, %v106_v41  ;;  %v133_v27 = vmul.u32 %v131_v15, %v106_v41  ;;  %v134_v30 = vmul.u32 %v130_v14, %v107_v46 }
  0x2a   :  { %v110_v20 = vmul.u32 %v108_v10, %v106_v41  ;;  %v111_v21 = vmul.u32 %v109_v12, %v106_v41  ;;  %v112_v22 = vmul.u32 %v108_v10, %v107_v46  ;;  %v113_v25 = vmul.u32 %v109_v12, %v107_v46 }
  0x2b   :  { %v135_v36 = vmul.u32 %v131_v15, %v107_v46  ;;  %v136_v40 = vshll.u32 %v133_v27, 16  ;;  %v137_v43 = vshrl.u32 %v133_v27, 16  ;;  %v138_v44 = vshll.u32 %v134_v30, 16 }
  0x2c   :  { %v114_v32 = vshll.u32 %v111_v21, 16  ;;  %v115_v33 = vshrl.u32 %v111_v21, 16  ;;  %v116_v34 = vshll.u32 %v112_v22, 16  ;;  %v117_v38 = vshrl.u32 %v112_v22, 16 }
  0x2d   :  { %v139_v45 = vshrl.u32 %v134_v30, 16  ;;  %v237_v47 = vshll.u32 %v678_v37, %v743_v29  ;;  %v681_v49 = vmov 0   ;;  %vm140_vm9 = vc.u32 %v132_v26, %v136_v40 }
  0x2e   :  { %vm118_vm8 = vc.u32 %v110_v20, %v114_v32  ;;  %v120_v35 = vadd.s32 %v114_v32, %v110_v20  ;;  %v142_v41 = vadd.s32 %v136_v40, %v132_v26  ;;  %v238_v51 = vshrl.u32 %v679_v39, %v758_v53 }
  0x2f   :  { %v119_v50 = vsel %vm118_vm8, 1, %v681_v49  ;;  %v141_v46 = vsel %vm140_vm9, 1, %v681_v49  ;;  %v240_v54 = vshll.u32 %v679_v39, %v743_v29  ;;  %v236_v37 = vor.u32 %v235_v23, %v234_v19 }
  0x30   :  { %v121_v52 = vadd.s32 %v119_v50, %v113_v25  ;;  %vm122_vm10 = vc.u32 %v120_v35, %v116_v34  ;;  %v143_v56 = vadd.s32 %v141_v46, %v135_v36  ;;  %vm144_vm11 = vc.u32 %v142_v41, %v138_v44 }
  0x31   :  { %v123_v55 = vsel %vm122_vm10, 1, %v681_v49  ;;  %v145_v58 = vsel %vm144_vm11, 1, %v681_v49  ;;  %v239_v60 = vor.u32 %v238_v51, %v237_v47  ;;  %v241_v61 = vshrl.u32 %v680_v48, %v758_v53 }
  0x32   :  { %v125_v57 = vadd.s32 %v123_v55, %v121_v52  ;;  %v811_v62 = vadd.s32 %v142_v41, %v138_v44  ;;  %v147_v63 = vadd.s32 %v145_v58, %v143_v56  ;;  %vm243_vm12 = vcmp.lt.s32.totalorder %v767_v59, 1 }
  0x33   :  { %vm245_vm13 = vcmp.lt.s32.totalorder %v767_v59, 3  ;;  %v242_v39 = vor.u32 %v241_v61, %v240_v54  ;;  %vm244_vm14 = vcmp.lt.s32.totalorder %v767_v59, 2  ;;  %vm246_vm15 = vcmp.lt.s32.totalorder %v767_v59, 4 }
  0x34   :  { %v126_v29 = vadd.s32 %v125_v57, %v115_v33  ;;  %v96_v0 = vsel %vm90_vm7, %v93_v4, %v95_v16  ;;  %v148_v1 = vadd.s32 %v147_v63, %v137_v43  ;;  %v251_v48 = vsel %vm243_vm12, %v792_v17, %v794_v18 }
  0x35   :  { %v252_v2 = vsel %vm246_vm15, %v239_v60, 920167782  ;;  %v255_v6 = vsel %vm243_vm12, %v794_v18, %v236_v37  ;;  %v261_v28 = vshrl.u32 %v749_v42, 16  ;;  %v256_v10 = vsel %vm246_vm15, %v242_v39, 1326507024 }
  0x36   :  { %v825_v3 = vadd.s32 %v126_v29, %v117_v38  ;;  %v253_v5 = vsel %vm245_vm13, %v236_v37, %v252_v2  ;;  %v149_v4 = vadd.s32 %v148_v1, %v139_v45  ;;  %v260_v12 = vand.u32 65535, %v749_v42 }
  0x37   :  { %v254_v7 = vsel %vm244_vm14, %v251_v48, %v253_v5  ;;  %v150_v14 = vmul.u32 %v739_v24, %v96_v0  ;;  %v257_v15 = vsel %vm245_vm13, %v239_v60, %v256_v10  ;;  %v227_v47 = vshrl.u32 %v675_v31, %v758_v53 }
  0x38   :  { %vm152_vm0 = vc.u32 %v825_v3, %v811_v62  ;;  %v284_v16 = vand.u32 65535, %v254_v7  ;;  %v153_v19 = vadd.s32 1, %v149_v4  ;;  %v258_v20 = vsel %vm244_vm14, %v255_v6, %v257_v15 }
  0x39   :  { %v285_v21 = vshrl.u32 %v254_v7, 16  ;;  %v262_v22 = vand.u32 65535, %v258_v20  ;;  %v263_v23 = vshrl.u32 %v258_v20, 16  ;;  %v248_v46 = vsel %vm246_vm15, %v236_v37, 2102212464 }
  0x3a   :  { %v288_v25 = vmul.u32 %v284_v16, %v261_v28  ;;  %v154_v26 = vsel %vm152_vm0, %v153_v19, %v149_v4  ;;  %v286_v27 = vmul.u32 %v284_v16, %v260_v12  ;;  %v247_v31 = vsel %vm243_vm12, %v227_v47, %v792_v17 }
  0x3b   :  { %v287_v30 = vmul.u32 %v285_v21, %v260_v12  ;;  %v155_v32 = vadd.s32 %v154_v26, %v150_v14  ;;  %v264_v24 = vmul.u32 %v262_v22, %v260_v12  ;;  %v265_v33 = vmul.u32 %v263_v23, %v260_v12 }
  0x3c   :  { %v266_v34 = vmul.u32 %v262_v22, %v261_v28  ;;  %v289_v36 = vmul.u32 %v285_v21, %v261_v28  ;;  %v292_v40 = vshll.u32 %v288_v25, 16  ;;  %v267_v44 = vmul.u32 %v263_v23, %v261_v28 }
  0x3d   :  { %v290_v38 = vshll.u32 %v287_v30, 16  ;;  %v156_v43 = vadd.s32 536870912, %v155_v32  ;;  %v268_v35 = vshll.u32 %v265_v33, 16  ;;  %v269_v57 = vshrl.u32 %v265_v33, 16 }
  0x3e   :  { %v270_v45 = vshll.u32 %v266_v34, 16  ;;  %v291_v60 = vshrl.u32 %v287_v30, 16  ;;  %v249_v37 = vsel %vm245_vm13, %v794_v18, %v248_v46  ;;  %v271_v29 = vshrl.u32 %v266_v34, 16 }
  0x3f   :  { %vm294_vm2 = vc.u32 %v286_v27, %v290_v38  ;;  %v296_v50 = vadd.s32 %v290_v38, %v286_v27  ;;  %v847_v41 = vshrl.u32 %v156_v43, 30  ;;  %vm272_vm3 = vc.u32 %v264_v24, %v268_v35 }
  0x40   :  { %v274_v51 = vadd.s32 %v268_v35, %v264_v24  ;;  %v295_v52 = vsel %vm294_vm2, 1, %v681_v49  ;;  %v273_v54 = vsel %vm272_vm3, 1, %v681_v49  ;;  %v293_v0 = vshrl.u32 %v288_v25, 16 }
  0x41   :  { %v297_v55 = vadd.s32 %v295_v52, %v289_v36  ;;  %vm298_vm4 = vc.u32 %v296_v50, %v292_v40  ;;  %v158_v56 = vshll.u32 %v847_v41, 30  ;;  %v275_v58 = vadd.s32 %v273_v54, %v267_v44 }
  0x42   :  { %vm276_vm5 = vc.u32 %v274_v51, %v270_v45  ;;  %v299_v61 = vsel %vm298_vm4, 1, %v681_v49  ;;  %v300_v5 = vadd.s32 %v296_v50, %v292_v40  ;;  %v250_v17 = vsel %vm244_vm14, %v247_v31, %v249_v37 }
  0x43   :  { %v277_v53 = vsel %vm276_vm5, 1, %v681_v49  ;;  %v159_v63 = vsub.s32 %v155_v32, %v158_v56  ;;  %v301_v1 = vadd.s32 %v299_v61, %v297_v55  ;;  %v304_v10 = vmul.u32 %v749_v42, %v250_v17 }
  0x44   :  { %v279_v39 = vadd.s32 %v277_v53, %v275_v58  ;;  %v151_v14 = vadd.s32 %v811_v62, %v825_v3  ;;  %vm59_vm10 = vcmp.lt.s32.totalorder %v726_v8, 0  ;;  %vm873_vm11 = vcmp.le.f32.partialorder %v57_v11, 0.7853982 }
  0x45   :  { %vm160_vm6 = vcmp.lt.s32.totalorder %v159_v63, 0  ;;  %v161_v48 = vsub.s32 0, %v159_v63  ;;  %v302_v6 = vadd.s32 %v301_v1, %v291_v60  ;;  %v181_v45 = vsub.s32 4, %v847_v41 }
  0x46   :  { %v280_v2 = vadd.s32 %v279_v39, %v269_v57  ;;  %vm213_vm14 = vcmp.lt.s32.totalorder %v728_v9, 0  ;;  %vm891_vm0 = vcmp.le.f32.partialorder %v211_v13, 0.7853982  ;;  %vm200_vm3 = vweird.f32 %v726_v8 }
  0x47   :  { %v162_v28 = vsel %vm160_vm6, %v161_v48, %v159_v63  ;;  %v303_v7 = vadd.s32 %v302_v6, %v293_v0  ;;  %v182_v56 = vsel %vm59_vm10, %v181_v45, %v847_v41  ;;  %v454_v48 = vld [vmem:[#allocation2 + $0x78] sm:$0xff]  ;;  %v444_v45 = vld [vmem:[#allocation2 + $0x28] sm:$0xff] }
  0x48   :  { %v281_v4 = vadd.s32 %v280_v2, %v271_v29  ;;  %v163_v49 = vclz %v162_v28  ;;  %v184_v61 = vsel %vm873_vm11, 0, %v182_v56  ;;  %v453_v2 = vld [vmem:[#allocation2 + $0x70] sm:$0xff]  ;;  %457 = vmatpush.msra.mxu2 %v454_v48 }
  0x49   :  { %v307_v12 = vadd.s32 1, %v303_v7 }
  0x4a   :  { %vm306_vm7 = vc.u32 %v281_v4, %v300_v5  ;;  %v575_v18 = vadd.s32 4294967294, %v163_v49  ;;  %v305_v51 = vadd.s32 %v300_v5, %v281_v4  ;;  %v201_v5 = vand.u32 3, %v184_v61  ;;  %v452_v4 = vld [vmem:[#allocation2 + $0x68] sm:$0xff]  ;;  %458 = vmatpush.msra.mxu2 %v453_v2  ;;  %v442_v61 = vld [vmem:[#allocation2 + $0x18] sm:$0xff]  ;;  %v615_v2 = vld [vmem:[#allocation4] ss:$0 sm:$0xff] }
  0x4b   :  { %v308_v15 = vsel %vm306_vm7, %v307_v12, %v303_v7  ;;  %vm354_vm7 = vweird.f32 %v728_v9 }
  0x4c   :  { %vm576_vm8 = vcmp.lt.s32.totalorder %v575_v18, 0  ;;  %v309_v19 = vadd.s32 %v308_v15, %v304_v10  ;;  %vm206_vm13 = vcmp.eq.s32.totalorder %v201_v5, 2  ;;  %459 = vmatpush.msra.mxu2 %v452_v4  ;;  %vm203_vm15 = vcmp.eq.s32.totalorder %v201_v5, 0  ;;  %v491_v4 = vld [vmem:[#allocation2 + $0xc8] sm:$0xff] }
  0x4d   :  { %v166_v16 = vsel %vm576_vm8, 0, %v575_v18  ;;  %v451_v18 = vld [vmem:[#allocation2 + $0x60] sm:$0xff]  ;;  %vm202_vm2 = vcmp.lt.s32.totalorder %v201_v5, 2 }
  0x4e   :  { %v167_v20 = vsub.s32 32, %v166_v16  ;;  %v168_v59 = vshll.u32 %v159_v63, %v166_v16  ;;  %v171_v21 = vsub.s32 4294967266, %v166_v16  ;;  %v310_v22 = vadd.s32 536870912, %v309_v19  ;;  %v450_v16 = vld [vmem:[#allocation2 + $0x58] sm:$0xff]  ;;  %460 = vmatpush.msra.mxu2 %v451_v18  ;;  %v488_v18 = vld [vmem:[#allocation2 + $0xb0] sm:$0xff] }
  0x50   :  { %v169_v23 = vshrl.u32 %v151_v14, %v167_v20  ;;  %v172_v25 = vadd.s32 127, %v171_v21  ;;  %v867_v26 = vshrl.u32 %v310_v22, 30  ;;  %v449_v22 = vld [vmem:[#allocation2 + $0x50] sm:$0xff]  ;;  %461 = vmatpush.msra.mxu2 %v450_v16 }
  0x52   :  { %v170_v27 = vor.u32 %v169_v23, %v168_v59  ;;  %v173_v42 = vshll.u32 %v172_v25, 23  ;;  %v312_v30 = vshll.u32 %v867_v26, 30  ;;  %462 = vmatpush.msra.mxu2 %v449_v22  ;;  %v484_v22 = vld [vmem:[#allocation2 + $0x90] sm:$0xff] }
  0x54   :  { %v174_v32 = vor.u32 4788187, %v173_v42  ;;  %v177_v24 = vcvt.s32.f32 %v170_v27  ;;  %v313_v33 = vsub.s32 %v309_v19, %v312_v30  ;;  %v335_v27 = vsub.s32 4, %v867_v26  ;;  %v448_v42 = vld [vmem:[#allocation2 + $0x48] sm:$0xff] }
  0x55   :  { %463 = vmatpush.msra.mxu2 %v448_v42  ;;  %v538_v42 = vld [vmem:[#allocation2 + $0x168] sm:$0xff] }
  0x56   :  { %v175_v62 = vand.u32 2147483647, %v174_v32  ;;  %vm314_vm9 = vcmp.lt.s32.totalorder %v313_v33, 0  ;;  %v315_v3 = vsub.s32 0, %v313_v33 }
  0x58   :  { %v178_v34 = vmul.f32 %v177_v24, %v175_v62  ;;  %v316_v36 = vsel %vm314_vm9, %v315_v3, %v313_v33  ;;  %v336_v3 = vsel %vm213_vm14, %v335_v27, %v867_v26  ;;  %v540_v27 = vld [vmem:[#allocation2 + $0x178] sm:$0xff] }
  0x59   :  { %v317_v43 = vclz %v316_v36  ;;  %543 = vmatpush.msrb.mxu0 %v540_v27  ;;  %586 = vmatpush.msrb.mxu1 %v540_v27 }
  0x5a   :  { %v179_v40 = vxor.u32 2147483648, %v178_v34 }
  0x5b   :  { %v578_v35 = vadd.s32 4294967294, %v317_v43  ;;  %v338_v43 = vsel %vm891_vm0, 0, %v336_v3  ;;  %v534_v3 = vld [vmem:[#allocation2 + $0x148] sm:$0xff] }
  0x5c   :  { %v180_v44 = vsel %vm59_vm10, %v179_v40, %v178_v34  ;;  %v446_v34 = vld [vmem:[#allocation2 + $0x38] sm:$0xff]  ;;  %v445_v40 = vld [vmem:[#allocation2 + $0x30] sm:$0xff] }
  0x5d   :  { %v183_v47 = vsel %vm873_vm11, %v726_v8, %v180_v44  ;;  %vm579_vm12 = vcmp.lt.s32.totalorder %v578_v35, 0 }
  0x5e   :  { %v185_v50 = vmul.f32 %v183_v47, %v183_v47  ;;  %v320_v52 = vsel %vm579_vm12, 0, %v578_v35 }
  0x5f   :  { %v321_v54 = vsub.s32 32, %v320_v52  ;;  %v322_v55 = vshll.u32 %v313_v33, %v320_v52  ;;  %v325_v57 = vsub.s32 4294967266, %v320_v52  ;;  %v447_v33 = vld [vmem:[#allocation2 + $0x40] sm:$0xff] }
  0x60   :  { %v186_v11 = vmul.f32 -0.001358992, %v185_v50  ;;  %v193_v46 = vmul.f32 -0.00019511016, %v185_v50  ;;  %464 = vmatpush.msra.mxu2 %v447_v33  ;;  %v443_v52 = vld [vmem:[#allocation2 + $0x20] sm:$0xff] }
  0x61   :  { %v323_v53 = vshrl.u32 %v305_v51, %v321_v54  ;;  %v326_v60 = vadd.s32 127, %v325_v57  ;;  %v355_v51 = vand.u32 3, %v338_v43  ;;  %v530_v43 = vld [vmem:[#allocation2 + $0x128] sm:$0xff] }
  0x62   :  { %v187_v58 = vadd.f32 0.041655596, %v186_v11  ;;  %v194_v31 = vadd.f32 0.008332121, %v193_v46  ;;  %465 = vmatpush.msra.mxu2 %v446_v34 }
  0x63   :  { %v324_v29 = vor.u32 %v323_v53, %v322_v55  ;;  %v327_v39 = vshll.u32 %v326_v60, 23  ;;  %vm360_vm4 = vcmp.eq.s32.totalorder %v355_v51, 2  ;;  %vm357_vm5 = vcmp.eq.s32.totalorder %v355_v51, 0 }
  0x64   :  { %v188_v63 = vmul.f32 %v187_v58, %v185_v50  ;;  %v195_v37 = vmul.f32 %v194_v31, %v185_v50  ;;  %466 = vmatpush.msra.mxu2 %v445_v40  ;;  %vm356_vm6 = vcmp.lt.s32.totalorder %v355_v51, 2  ;;  %v531_v40 = vld [vmem:[#allocation2 + $0x130] sm:$0xff] }
  0x65   :  { %v328_v17 = vor.u32 4788187, %v327_v39  ;;  %v331_v6 = vcvt.s32.f32 %v324_v29  ;;  %v439_v29 = vld [vmem:[#allocation2] sm:$0xff]  ;;  %v497_v39 = vld [vmem:[#allocation2 + $0xf8] sm:$0xff]  ;;  %v527_v51 = vld [vmem:[#allocation2 + $0x110] sm:$0xff] }
  0x66   :  { %v189_v0 = vadd.f32 -0.4999988, %v188_v63  ;;  %v196_v1 = vadd.f32 -0.16666654, %v195_v37  ;;  %467 = vmatpush.msra.mxu2 %v444_v45  ;;  %v441_v63 = vld [vmem:[#allocation2 + $0x10] sm:$0xff]  ;;  %v440_v37 = vld [vmem:[#allocation2 + $0x8] sm:$0xff]  ;;  %500 = vmatpush.msra.mxu3 %v497_v39 }
  0x67   :  { %v329_v49 = vand.u32 2147483647, %v328_v17  ;;  %v493_v17 = vld [vmem:[#allocation2 + $0xd8] sm:$0xff] }
  0x68   :  { %v190_v41 = vmul.f32 %v189_v0, %v185_v50  ;;  %v197_v28 = vmul.f32 %v196_v1, %v185_v50  ;;  %468 = vmatpush.msra.mxu2 %v443_v52  ;;  %v496_v0 = vld [vmem:[#allocation2 + $0xf0] sm:$0xff]  ;;  %v495_v1 = vld [vmem:[#allocation2 + $0xe8] sm:$0xff] }
  0x69   :  { %v332_v12 = vmul.f32 %v331_v6, %v329_v49  ;;  %501 = vmatpush.msra.mxu3 %v496_v0  ;;  %v526_v52 = vld [vmem:[#allocation2 + $0x108] sm:$0xff] }
  0x6a   :  { %v191_v7 = vadd.f32 1.0, %v190_v41  ;;  %v198_v10 = vadd.f32 1.0, %v197_v28  ;;  %469 = vmatpush.msra.mxu2 %v442_v61  ;;  %v492_v41 = vld [vmem:[#allocation2 + $0xd0] sm:$0xff] }
  0x6b   :  { %v333_v20 = vxor.u32 2147483648, %v332_v12  ;;  %502 = vmatpush.msra.mxu3 %v495_v1 }
  0x6c   :  { %v199_v14 = vmul.f32 %v198_v10, %v183_v47  ;;  %v207_v15 = vxor.u32 2147483648, %v191_v7  ;;  %470 = vmatpush.msra.mxu2 %v441_v63  ;;  %v489_v10 = vld [vmem:[#allocation2 + $0xb8] sm:$0xff] }
  0x6d   :  { %v334_v23 = vsel %vm213_vm14, %v333_v20, %v332_v12  ;;  %v487_v12 = vld [vmem:[#allocation2 + $0xa8] sm:$0xff] }
  0x6e   :  { %v204_v59 = vxor.u32 2147483648, %v199_v14  ;;  %v208_v21 = vsel %vm206_vm13, %v207_v15, %v199_v14  ;;  %v337_v13 = vsel %vm891_vm0, %v728_v9, %v334_v23  ;;  %471 = vmatpush.msra.mxu2 %v440_v37  ;;  %v494_v9 = vld [vmem:[#allocation2 + $0xe0] sm:$0xff]  ;;  %v485_v15 = vld [vmem:[#allocation2 + $0x98] sm:$0xff]  ;;  %v483_v23 = vld [vmem:[#allocation2 + $0x88] sm:$0xff] }
  0x6f   :  { %v339_v32 = vmul.f32 %v337_v13, %v337_v13  ;;  %503 = vmatpush.msra.mxu3 %v494_v9  ;;  %v486_v14 = vld [vmem:[#allocation2 + $0xa0] sm:$0xff] }
  0x70   :  { %v205_v25 = vsel %vm203_vm15, %v191_v7, %v204_v59  ;;  %472 = vmatpush.msra.mxu2 %v439_v29  ;;  %v490_v7 = vld [vmem:[#allocation2 + $0xc0] sm:$0xff] }
  0x71   :  { %v209_v30 = vsel %vm202_vm2, %v205_v25, %v208_v21  ;;  %v340_v8 = vmul.f32 -0.001358992, %v339_v32  ;;  %v347_v62 = vmul.f32 -0.00019511016, %v339_v32  ;;  %504 = vmatpush.msra.mxu3 %v493_v17  ;;  %v482_v25 = vld [vmem:[#allocation2 + $0x80] sm:$0xff] }
  0x72   :  { %v210_v24 = vsel %vm200_vm3, nan, %v209_v30  ;;  %v537_v30 = vld [vmem:[#allocation2 + $0x160] sm:$0xff] }
  0x73   :  { %584 = vmatmul.msk.f32.vlgmr.msra.gmra.mxu1 %vm367_vm1, %v210_v24  ;;  %v341_v36 = vadd.f32 0.041655596, %v340_v8  ;;  %v348_v38 = vadd.f32 0.008332121, %v347_v62  ;;  %505 = vmatpush.msra.mxu3 %v492_v41  ;;  %v536_v24 = vld [vmem:[#allocation2 + $0x158] sm:$0xff]  ;;  %v535_v8 = vld [vmem:[#allocation2 + $0x150] sm:$0xff] }
  0x75   :  { %v342_v44 = vmul.f32 %v341_v36, %v339_v32  ;;  %v349_v35 = vmul.f32 %v348_v38, %v339_v32  ;;  %506 = vmatpush.msra.mxu3 %v491_v4  ;;  %v533_v36 = vld [vmem:[#allocation2 + $0x140] sm:$0xff]  ;;  %v532_v38 = vld [vmem:[#allocation2 + $0x138] sm:$0xff] }
  0x77   :  { %v343_v47 = vadd.f32 -0.4999988, %v342_v44  ;;  %v350_v50 = vadd.f32 -0.16666654, %v349_v35  ;;  %507 = vmatpush.msra.mxu3 %v490_v7  ;;  %v529_v44 = vld [vmem:[#allocation2 + $0x120] sm:$0xff]  ;;  %v528_v35 = vld [vmem:[#allocation2 + $0x118] sm:$0xff] }
  0x79   :  { %v344_v11 = vmul.f32 %v343_v47, %v339_v32  ;;  %v351_v46 = vmul.f32 %v350_v50, %v339_v32  ;;  %508 = vmatpush.msra.mxu3 %v489_v10  ;;  %v616_v32 = vld [vmem:[#allocation4 + $0x1] ss:$0 sm:$0xff] }
  0x7b   :  { %v345_v26 = vadd.f32 1.0, %v344_v11  ;;  %v352_v54 = vadd.f32 1.0, %v351_v46  ;;  %509 = vmatpush.msra.mxu3 %v488_v18  ;;  %v525_v11 = vld [vmem:[#allocation2 + $0x100] sm:$0xff] }
  0x7c   :  { %v617_v46 = vld [vmem:[#allocation4 + $0x2] ss:$0 sm:$0xff] }
  0x7d   :  { %v353_v55 = vmul.f32 %v352_v54, %v337_v13  ;;  %v361_v56 = vxor.u32 2147483648, %v345_v26  ;;  %510 = vmatpush.msra.mxu3 %v487_v12  ;;  %v539_v13 = vld [vmem:[#allocation2 + $0x170] sm:$0xff] }
  0x7e   :  { %544 = vmatpush.msrb.mxu0 %v539_v13  ;;  %587 = vmatpush.msrb.mxu1 %v539_v13 }
  0x7f   :  { %v358_v57 = vxor.u32 2147483648, %v353_v55  ;;  %v362_v58 = vsel %vm360_vm4, %v361_v56, %v353_v55  ;;  %511 = vmatpush.msra.mxu3 %v486_v14 }
  0x80   :  { %545 = vmatpush.msrb.mxu0 %v538_v42  ;;  %588 = vmatpush.msrb.mxu1 %v538_v42 }
  0x81   :  { %v359_v31 = vsel %vm357_vm5, %v345_v26, %v358_v57  ;;  %512 = vmatpush.msra.mxu3 %v485_v15 }
  0x82   :  { %v363_v53 = vsel %vm356_vm6, %v359_v31, %v362_v58  ;;  %546 = vmatpush.msrb.mxu0 %v537_v30  ;;  %589 = vmatpush.msrb.mxu1 %v537_v30  ;;  %v618_v31 = vld [vmem:[#allocation4 + $0x3] ss:$0 sm:$0xff] }
  0x83   :  { %v364_v60 = vsel %vm354_vm7, nan, %v363_v53  ;;  %513 = vmatpush.msra.mxu3 %v484_v22 }
  0x84   :  { %585 = vmatmul.msk.f32.gmra.mxu1 %vm367_vm1, %v364_v60  ;;  %547 = vmatpush.msrb.mxu0 %v536_v24 }
  0x85   :  { %514 = vmatpush.msra.mxu3 %v483_v23  ;;  %590 = vmatpush.msrb.mxu1 %v536_v24 }
  0x86   :  { %548 = vmatpush.msrb.mxu0 %v535_v8 }
  0x87   :  { %515 = vmatpush.msra.mxu3 %v482_v25  ;;  %591 = vmatpush.msrb.mxu1 %v535_v8 }
  0x88   :  { %549 = vmatpush.msrb.mxu0 %v534_v3 }
  0x89   :  { %592 = vmatpush.msrb.mxu1 %v534_v3 }
  0x8a   :  { %550 = vmatpush.msrb.mxu0 %v533_v36 }
  0x8b   :  { %v395_v48 = vpop.f32.mrf.mxu0  ;;  %593 = vmatpush.msrb.mxu1 %v533_v36 }
  0x8c   :  { %551 = vmatpush.msrb.mxu0 %v532_v38 }
  0x8d   :  { %594 = vmatpush.msrb.mxu1 %v532_v38 }
  0x8e   :  { %552 = vmatpush.msrb.mxu0 %v531_v40 }
  0x8f   :  { %595 = vmatpush.msrb.mxu1 %v531_v40 }
  0x90   :  { %553 = vmatpush.msrb.mxu0 %v530_v43 }
  0x91   :  { %596 = vmatpush.msrb.mxu1 %v530_v43 }
  0x92   :  { %554 = vmatpush.msrb.mxu0 %v529_v44 }
  0x93   :  { %v398_v16 = vpop.f32.mrf.mxu0  ;;  %597 = vmatpush.msrb.mxu1 %v529_v44 }
  0x94   :  { %555 = vmatpush.msrb.mxu0 %v528_v35 }
  0x95   :  { %598 = vmatpush.msrb.mxu1 %v528_v35 }
  0x96   :  { %556 = vmatpush.msrb.mxu0 %v527_v51 }
  0x97   :  { %599 = vmatpush.msrb.mxu1 %v527_v51 }
  0x98   :  { %557 = vmatpush.msrb.mxu0 %v526_v52 }
  0x99   :  { %600 = vmatpush.msrb.mxu1 %v526_v52 }
  0x9a   :  { %558 = vmatpush.msrb.mxu0 %v525_v11 }
  0x9b   :  { %601 = vmatpush.msrb.mxu1 %v525_v11 }
  0xf0   :  { %v427_v5 = vpop.f32.mrf.mxu1 }
  0xf1   :  { %v428_v6 = vadd.f32 %v427_v5, %v395_v48 }
  0xf3   :  { %v435_v28 = vadd.f32 %v615_v2, %v428_v6 }
  0xf5   :  { %v437_v49 = vmax.f32 %v435_v28, 0.0 }
  0xf7   :  { %473 = vmatmul.f32.vlgmr.msra.gmra.mxu2 %v437_v49 }
 0x101   :  { %v430_v19 = vpop.f32.mrf.mxu1 }
 0x102   :  { %v431_v20 = vadd.f32 %v430_v19, %v398_v16 }
 0x104   :  { %v436_v59 = vadd.f32 %v615_v2, %v431_v20 }
 0x106   :  { %v438_v21 = vmax.f32 %v436_v59, 0.0 }
 0x108   :  { %476 = vmatmul.f32.gmra.mxu2 %v438_v21 }
 0x17a   :  { %v474_v33 = vpop.f32.mrf.mxu2 }
 0x17b   :  { %v475_v62 = vadd.f32 %v616_v32, %v474_v33 }
 0x17d   :  { %v480_v34 = vmax.f32 %v475_v62, 0.0 }
 0x17f   :  { %516 = vmatmul.f32.vlgmr.msra.gmra.mxu3 %v480_v34 }
 0x18b   :  { %v477_v45 = vpop.f32.mrf.mxu2 }
 0x18c   :  { %v478_v47 = vadd.f32 %v616_v32, %v477_v45 }
 0x18e   :  { %v481_v50 = vmax.f32 %v478_v47, 0.0 }
 0x190   :  { %519 = vmatmul.f32.gmra.mxu3 %v481_v50 }
 0x202   :  { %v517_v26 = vpop.f32.mrf.mxu3 }
 0x203   :  { %v518_v54 = vadd.f32 %v617_v46, %v517_v26 }
 0x205   :  { %v523_v55 = vmax.f32 %v518_v54, 0.0 }
 0x207   :  { %559 = vmatmul.f32.vlgmr.msrb.gmra.mxu0 %v523_v55 }
 0x213   :  { %v520_v56 = vpop.f32.mrf.mxu3 }
 0x214   :  { %v521_v57 = vadd.f32 %v617_v46, %v520_v56 }
 0x216   :  { %v524_v58 = vmax.f32 %v521_v57, 0.0 }
 0x218   :  { %562 = vmatmul.f32.vlgmr.msrb.gmra.mxu1 %v524_v58 }
 0x284   :  { %v560_v53 = vpop.f32.mrf.mxu0 }
 0x285   :  { %v561_v60 = vadd.f32 %v618_v31, %v560_v53 }
 0x287   :  { %566 = vst [vmem:[%s920_s4] sm:$0xff] %v561_v60 }
 0x295   :  { %v563_v61 = vpop.f32.mrf.mxu1 }
 0x296   :  { %v564_v63 = vadd.f32 %v618_v31, %v563_v61 }
 0x298   :  { %567 = vst [vmem:[%s920_s4 + $0x8] sm:$0xff] %v564_v63 }
 0x299   :  { %572 = vsyncpa [#allocation3], 1 }
 0x29a   :  { %573 = vsyncpa [#allocation5], 1 }

</bundles_post_ra>
